<compile_context>
chip_gen: v6e
topology: v6e:2x2x1
jax: 0.10.0
libtpu: 0.0.40
codegen_flags: <defaults>
</compile_context>

<pallas_src>
import math
import functools

import jax
import jax.numpy as jnp
from jax import lax
from jax.experimental import pallas as pl
from jax.experimental.pallas import tpu as pltpu


# ----------------------------------------------------------------------------
# helpers
# ----------------------------------------------------------------------------
def _pick_tile(dim, preferred, quantum):
    """Largest tile <= preferred that is a multiple of `quantum` and divides `dim`.
    Falls back to the full dim (always a legal block: block == array extent)."""
    if dim <= preferred:
        return dim
    t = (preferred // quantum) * quantum
    while t >= quantum:
        if dim % t == 0:
            return t
        t -= quantum
    return dim


# ----------------------------------------------------------------------------
# Tiled projection matmul: (M, K) @ (K, N) -> (M, N), bf16 MXU / fp32 accumulate
# ----------------------------------------------------------------------------
def _matmul_kernel(x_ref, w_ref, o_ref, acc_ref):
    @pl.when(pl.program_id(2) == 0)
    def _():
        acc_ref[...] = jnp.zeros_like(acc_ref)

    acc_ref[...] += jnp.dot(x_ref[...], w_ref[...],
                            preferred_element_type=jnp.float32)

    @pl.when(pl.program_id(2) == pl.num_programs(2) - 1)
    def _():
        o_ref[...] = acc_ref[...].astype(o_ref.dtype)


def matmul_pallas(x, w, out_dtype=jnp.bfloat16, tm=256, tn=256, tk=512):
    """K-tiled, accumulator-in-VMEM matmul.  Inputs are cast to bf16 for the MXU."""
    x = x.astype(jnp.bfloat16)
    w = w.astype(jnp.bfloat16)
    M, K = x.shape
    _, N = w.shape
    tm = _pick_tile(M, tm, 8)
    tn = _pick_tile(N, tn, 128)
    tk = _pick_tile(K, tk, 128)
    grid = (M // tm, N // tn, K // tk)
    return pl.pallas_call(
        _matmul_kernel,
        out_shape=jax.ShapeDtypeStruct((M, N), out_dtype),
        grid=grid,
        in_specs=[pl.BlockSpec((tm, tk), lambda i, j, k: (i, k)),
                  pl.BlockSpec((tk, tn), lambda i, j, k: (k, j))],
        out_specs=pl.BlockSpec((tm, tn), lambda i, j, k: (i, j)),
        scratch_shapes=[pltpu.VMEM((tm, tn), jnp.float32)],
        compiler_params=pltpu.CompilerParams(
            dimension_semantics=("parallel", "parallel", "arbitrary")),
    )(x, w)


# ----------------------------------------------------------------------------
# Flash attention kernel: RMSNorm(q,k) + RoPE fused, online softmax over kv tiles
# ----------------------------------------------------------------------------
def _flash_attn_kernel(q_ref, k_ref, v_ref, caq_ref, cbq_ref, cak_ref, cbk_ref,
                       qs_ref, ks_ref, o_ref,
                       qrot_ref, m_ref, l_ref, acc_ref):
    ki = pl.program_id(3)
    hd = q_ref.shape[3]
    h2 = hd // 2

    def norm_rope(x, scale, ca, cb):
        # RMSNorm over head_dim (eps = 1e-6) * learnable scale; fp32 elementwise
        # (bf16 is reserved for the MXU inputs; v5e has no bf16 VPU anyway).
        x = x.astype(jnp.float32)
        x = x * lax.rsqrt(jnp.mean(x * x, axis=-1, keepdims=True) + 1e-6) * scale
        # RoPE in de-interleaved ([even | odd]) head_dim layout; produces the full
        # rotated (rows, hd) tile so the score matmul is a single hd-deep contraction.
        xe = x[:, :h2]
        xo = x[:, h2:]
        re = ca[:, :h2] * xe + cb[:, :h2] * xo
        ro = cb[:, h2:] * xe + ca[:, h2:] * xo
        return jnp.concatenate([re, ro], axis=-1)

    @pl.when(ki == 0)
    def _():
        # q prep happens once per (b, h, q-tile) and is reused across all kv steps.
        qrot_ref[...] = norm_rope(q_ref[0, 0], qs_ref[...],
                                  caq_ref[...], cbq_ref[...]).astype(jnp.bfloat16)
        m_ref[...] = jnp.full_like(m_ref, -jnp.inf)
        l_ref[...] = jnp.zeros_like(l_ref)
        acc_ref[...] = jnp.zeros_like(acc_ref)

    k_rot = norm_rope(k_ref[0, 0], ks_ref[...],
                      cak_ref[...], cbk_ref[...]).astype(jnp.bfloat16)

    # Scores: single full-head_dim contraction (sm_scale already folded into qs_ref).
    dn = (((1,), (1,)), ((), ()))
    s = lax.dot_general(qrot_ref[...], k_rot, dn,
                        preferred_element_type=jnp.float32)          # (tq, tkv)

    m_prev = m_ref[...]
    m_new = jnp.maximum(m_prev, jnp.max(s, axis=-1, keepdims=True))
    alpha = jnp.exp(m_prev - m_new)
    p = jnp.exp(s - m_new)
    l_ref[...] = alpha * l_ref[...] + jnp.sum(p, axis=-1, keepdims=True)
    acc_ref[...] = alpha * acc_ref[...] + jnp.dot(
        p.astype(jnp.bfloat16), v_ref[0, 0], preferred_element_type=jnp.float32)
    m_ref[...] = m_new

    @pl.when(ki == pl.num_programs(3) - 1)
    def _():
        o_ref[0, 0] = (acc_ref[...] *
                       pl.reciprocal(l_ref[...], approx=True)).astype(o_ref.dtype)


def flash_attention_pallas(q, k, v, coef_a, coef_b, q_scale, k_scale,
                           tq=256, tkv=512):
    """q,k,v: (B, H, S, hd) bf16; coef_a/b: (S, hd) f32; scales: (1, hd) f32."""
    b, h, s, hd = q.shape
    tq = _pick_tile(s, tq, 8)
    tkv = _pick_tile(s, tkv, 8)
    grid = (b, h, s // tq, s // tkv)

    q_spec = pl.BlockSpec((1, 1, tq, hd), lambda bi, hi, qi, ki: (bi, hi, qi, 0))
    kv_spec = pl.BlockSpec((1, 1, tkv, hd), lambda bi, hi, qi, ki: (bi, hi, ki, 0))
    cq_spec = pl.BlockSpec((tq, hd), lambda bi, hi, qi, ki: (qi, 0))
    ck_spec = pl.BlockSpec((tkv, hd), lambda bi, hi, qi, ki: (ki, 0))
    sc_spec = pl.BlockSpec((1, hd), lambda bi, hi, qi, ki: (0, 0))

    return pl.pallas_call(
        _flash_attn_kernel,
        out_shape=jax.ShapeDtypeStruct((b, h, s, hd), jnp.bfloat16),
        grid=grid,
        in_specs=[q_spec, kv_spec, kv_spec,
                  cq_spec, cq_spec, ck_spec, ck_spec, sc_spec, sc_spec],
        out_specs=q_spec,
        scratch_shapes=[pltpu.VMEM((tq, hd), jnp.bfloat16),   # q_rot (persists over kv)
                        pltpu.VMEM((tq, 1), jnp.float32),     # m (running max)
                        pltpu.VMEM((tq, 1), jnp.float32),     # l (running denom)
                        pltpu.VMEM((tq, hd), jnp.float32)],   # acc (running context)
        compiler_params=pltpu.CompilerParams(
            dimension_semantics=("parallel", "parallel", "parallel", "arbitrary")),
    )(q, k, v, coef_a, coef_b, coef_a, coef_b, q_scale, k_scale)


# ----------------------------------------------------------------------------
# One-time parameter / RoPE preparation (hoisted out of the per-step forward)
# ----------------------------------------------------------------------------
def prepare_params(params, num_heads):
    """Pre-transpose / split the weights, fold the even|odd de-interleave perm into
    the q/k weight columns and RMSNorm scales, fold sm_scale into q_scale, and
    concatenate [Wq|Wk|Wv] columns so QKV is a single fused matmul."""
    wqkv = params["wqkv"]                      # (3D, D) torch Linear layout
    wout = params["wout"]                      # (D, D)
    d = wqkv.shape[1]
    hd = d // num_heads
    perm = jnp.concatenate([jnp.arange(0, hd, 2), jnp.arange(1, hd, 2)])

    w_t = wqkv.T.reshape(d, 3, num_heads, hd)  # (D_in, 3, H, hd)
    wq_t = w_t[:, 0][..., perm].reshape(d, d)  # q columns de-interleaved per head
    wk_t = w_t[:, 1][..., perm].reshape(d, d)
    wv_t = w_t[:, 2].reshape(d, d)             # v untouched (no RoPE on v)
    wqkv_t = jnp.concatenate([wq_t, wk_t, wv_t], axis=1)   # (D_in, 3D) fused columns

    sm_scale = 1.0 / math.sqrt(hd)
    return {
        "wqkv_t": wqkv_t.astype(jnp.bfloat16),
        "wout_t": wout.T.astype(jnp.bfloat16),
        "q_scale": (params["q_scale"][perm] * sm_scale)[None, :].astype(jnp.float32),
        "k_scale": params["k_scale"][perm][None, :].astype(jnp.float32),
    }


def prepare_rope_coefs(pe):
    """pe: (B, S, 1, hd//2, 2, 2) -> de-interleaved coefficient tables (S, hd).
    RoPE depends only on position, so the batch dim is dropped.
    # TODO(synk): per-batch pe would need (B, S, hd) coefs and a batch-indexed spec."""
    p = pe[0, :, 0]                                                    # (S, hd//2, 2, 2)
    coef_a = jnp.concatenate([p[..., 0, 0], p[..., 1, 1]], axis=-1)    # (S, hd)
    coef_b = jnp.concatenate([p[..., 0, 1], p[..., 1, 0]], axis=-1)
    return coef_a.astype(jnp.float32), coef_b.astype(jnp.float32)


# ----------------------------------------------------------------------------
# Module forward (glue in plain JAX, hot paths in Pallas)
# ----------------------------------------------------------------------------
def flash_self_mha_forward(x, coef_a, coef_b, prepped, num_heads, tq=256, tkv=512):
    """x: (B, S, D) fp32.  Returns (B, S, D) fp32."""
    b, s, d = x.shape
    hd = d // num_heads
    x2d = x.reshape(b * s, d).astype(jnp.bfloat16)

    # Fused Q/K/V projection: one Pallas tiled matmul (M, D) @ (D, 3D), bf16 output.
    # qkv_bias=False in the module, so no bias add.
    qkv2d = matmul_pallas(x2d, prepped["wqkv_t"], out_dtype=jnp.bfloat16)
    q2d = qkv2d[:, :d]
    k2d = qkv2d[:, d:2 * d]
    v2d = qkv2d[:, 2 * d:]

    def to_heads(t):
        return jnp.transpose(t.reshape(b, s, num_heads, hd), (0, 2, 1, 3))

    # TODO(synk): these (B,S,H,hd)<->(B,H,S,hd) transposes are still XLA passes (bf16);
    # writing head-major directly from the projection out_specs needs per-head N tiles
    # which multiplies x re-reads by H, so the transpose is kept as the cheaper option.
    q = to_heads(q2d)
    k = to_heads(k2d)
    v = to_heads(v2d)

    # Fused RMSNorm + RoPE + flash attention (Pallas).  attn_drop=0.0 -> identity.
    ctx = flash_attention_pallas(q, k, v, coef_a, coef_b,
                                 prepped["q_scale"], prepped["k_scale"],
                                 tq=tq, tkv=tkv)                  # (B, H, S, hd) bf16

    # Output projection (Pallas tiled matmul).  proj_drop=0.0 -> identity.
    ctx2d = jnp.transpose(ctx, (0, 2, 1, 3)).reshape(b * s, d)
    out = matmul_pallas(ctx2d, prepped["wout_t"], out_dtype=jnp.float32)
    return out.reshape(b, s, d)


# ----------------------------------------------------------------------------
# Pure-JAX fp32 reference mirroring the PyTorch module
# ----------------------------------------------------------------------------
def reference_forward(x, pe, params, num_heads):
    b, s, d = x.shape
    hd = d // num_heads
    qkv = (x.reshape(b * s, d) @ params["wqkv"].T).reshape(b, s, 3, num_heads, hd)
    q, k, v = qkv[:, :, 0], qkv[:, :, 1], qkv[:, :, 2]            # (B, S, H, hd)

    def rms(t, scale):
        rrms = lax.rsqrt(jnp.mean(t * t, axis=-1, keepdims=True) + 1e-6)
        return t * rrms * scale

    q = rms(q, params["q_scale"])
    k = rms(k, params["k_scale"])

    def rope(t):
        t_ = t.reshape(*t.shape[:-1], hd // 2, 1, 2)
        out = pe[..., 0] * t_[..., 0] + pe[..., 1] * t_[..., 1]
        return out.reshape(t.shape)

    q = rope(q)
    k = rope(k)

    qh = jnp.transpose(q, (0, 2, 1, 3))
    kh = jnp.transpose(k, (0, 2, 1, 3))
    vh = jnp.transpose(v, (0, 2, 1, 3))
    scores = jnp.einsum("bhqd,bhkd->bhqk", qh, kh) / math.sqrt(hd)
    probs = jax.nn.softmax(scores, axis=-1)
    ctx = jnp.einsum("bhqk,bhkd->bhqd", probs, vh)
    ctx = jnp.transpose(ctx, (0, 2, 1, 3)).reshape(b * s, d)
    out = ctx @ params["wout"].T
    return out.reshape(b, s, d)


# ----------------------------------------------------------------------------
if __name__ == "__main__":
    B, S, NUM_HEADS, HEAD_DIM = 2, 16, 4, 8
    DIM = NUM_HEADS * HEAD_DIM

    key = jax.random.PRNGKey(0)
    kx, kw1, kw2, ks1, ks2 = jax.random.split(key, 5)

    x = jax.random.normal(kx, (B, S, DIM), dtype=jnp.float32)

    bound = 1.0 / math.sqrt(DIM)
    params = {
        "wqkv": jax.random.uniform(kw1, (3 * DIM, DIM), jnp.float32, -bound, bound),
        "wout": jax.random.uniform(kw2, (DIM, DIM), jnp.float32, -bound, bound),
        "q_scale": 1.0 + 0.1 * jax.random.normal(ks1, (HEAD_DIM,), jnp.float32),
        "k_scale": 1.0 + 0.1 * jax.random.normal(ks2, (HEAD_DIM,), jnp.float32),
    }

    # Rotary position-embedding tensor pe: (B, S, 1, HEAD_DIM//2, 2, 2)
    pos = jnp.arange(S, dtype=jnp.float32)[:, None]
    inv_freq = 1.0 / (10000.0 ** (jnp.arange(0, HEAD_DIM, 2, dtype=jnp.float32) / HEAD_DIM))
    ang = pos * inv_freq[None, :]                                    # (S, hd//2)
    cos, sin = jnp.cos(ang), jnp.sin(ang)
    rot = jnp.stack(
        [jnp.stack([cos, -sin], axis=-1), jnp.stack([sin, cos], axis=-1)], axis=-2
    )                                                                # (S, hd//2, 2, 2)
    pe = jnp.broadcast_to(rot[None, :, None], (B, S, 1, HEAD_DIM // 2, 2, 2))

    # One-time prep (hoisted out of the per-step forward).
    prepped = prepare_params(params, NUM_HEADS)
    coef_a, coef_b = prepare_rope_coefs(pe)

    fwd = jax.jit(functools.partial(flash_self_mha_forward, num_heads=NUM_HEADS))
    out = fwd(x, coef_a, coef_b, prepped)
    out = jax.block_until_ready(out)

    ref = reference_forward(x, pe, params, NUM_HEADS)
    assert out.shape == (B, S, DIM)
    # bf16 MXU inputs / fp32 accumulation vs fp32 reference (torch uses fp16 attention).
    assert jnp.allclose(out, ref, rtol=5e-2, atol=5e-2), "Pallas output mismatch"

    print("KERNEL_OK")
</pallas_src>

<mosaic_0001>
module attributes {stable_mosaic.version = 11 : i64} {
  func.func @_matmul_kernel(%arg0: i32, %arg1: i32, %arg2: i32, %arg3: memref<32x32xbf16, #tpu.memory_space<vmem>>, %arg4: memref<32x96xbf16, #tpu.memory_space<vmem>>, %arg5: memref<32x96xbf16, #tpu.memory_space<vmem>>, %arg6: memref<32x96xf32, #tpu.memory_space<vmem>>) attributes {dimension_semantics = [#tpu.dimension_semantics<parallel>, #tpu.dimension_semantics<parallel>, #tpu.dimension_semantics<arbitrary>], iteration_bounds = array<i64: 1, 1, 1>, scalar_prefetch = 0 : i64, scratch_operands = 1 : i64, tpu.core_type = #tpu.core_type<tc>, window_params = [{transform_indices = @transform_0, window_bounds = array<i64: 32, 32>}, {transform_indices = @transform_1, window_bounds = array<i64: 32, 96>}, {transform_indices = @transform_2, window_bounds = array<i64: 32, 96>}]} {
    %c0_i32 = arith.constant 0 : i32
    %0 = arith.cmpi eq, %arg2, %c0_i32 : i32
    %1 = arith.extui %0 : i1 to i32
    %c0_i32_0 = arith.constant 0 : i32
    %2 = arith.cmpi ne, %1, %c0_i32_0 : i32
    scf.if %2 {
      %cst_10 = arith.constant 0.000000e+00 : f32
      %12 = vector.broadcast %cst_10 : f32 to vector<32x96xf32>
      %c0_11 = arith.constant 0 : index
      %c0_12 = arith.constant 0 : index
      %13 = vector.load %arg6[%c0_11, %c0_12] : memref<32x96xf32, #tpu.memory_space<vmem>>, vector<32x96xf32>
      tpu.vector_store %arg6[%c0_11, %c0_12], %12 {strides = array<i32>} : memref<32x96xf32, #tpu.memory_space<vmem>>, vector<32x96xf32>,
    } else {
    }
    %c0 = arith.constant 0 : index
    %c0_1 = arith.constant 0 : index
    %3 = vector.load %arg6[%c0, %c0_1] : memref<32x96xf32, #tpu.memory_space<vmem>>, vector<32x96xf32>
    %c0_2 = arith.constant 0 : index
    %c0_3 = arith.constant 0 : index
    %4 = vector.load %arg3[%c0_2, %c0_3] : memref<32x32xbf16, #tpu.memory_space<vmem>>, vector<32x32xbf16>
    %c0_4 = arith.constant 0 : index
    %c0_5 = arith.constant 0 : index
    %5 = vector.load %arg4[%c0_4, %c0_5] : memref<32x96xbf16, #tpu.memory_space<vmem>>, vector<32x96xbf16>
    %cst = arith.constant dense<0.000000e+00> : vector<32x96xf32>
    %6 = tpu.matmul %4, %5, %cst {dimension_numbers = #tpu.dot_dimension_numbers<[1], [0], [0], [1], [0, 0, 1, 1], [], []>} : vector<32x32xbf16>, vector<32x96xbf16>, vector<32x96xf32> -> vector<32x96xf32>
    %7 = arith.addf %3, %6 : vector<32x96xf32>
    %c0_6 = arith.constant 0 : index
    %c0_7 = arith.constant 0 : index
    %8 = vector.load %arg6[%c0_6, %c0_7] : memref<32x96xf32, #tpu.memory_space<vmem>>, vector<32x96xf32>
    tpu.vector_store %arg6[%c0_6, %c0_7], %7 {strides = array<i32>} : memref<32x96xf32, #tpu.memory_space<vmem>>, vector<32x96xf32>,
    %c0_i32_8 = arith.constant 0 : i32
    %9 = arith.cmpi eq, %arg2, %c0_i32_8 : i32
    %10 = arith.extui %9 : i1 to i32
    %c0_i32_9 = arith.constant 0 : i32
    %11 = arith.cmpi ne, %10, %c0_i32_9 : i32
    scf.if %11 {
      %c0_10 = arith.constant 0 : index
      %c0_11 = arith.constant 0 : index
      %12 = vector.load %arg6[%c0_10, %c0_11] : memref<32x96xf32, #tpu.memory_space<vmem>>, vector<32x96xf32>
      %13 = arith.truncf %12 : vector<32x96xf32> to vector<32x96xbf16>
      %c0_12 = arith.constant 0 : index
      %c0_13 = arith.constant 0 : index
      %14 = vector.load %arg5[%c0_12, %c0_13] : memref<32x96xbf16, #tpu.memory_space<vmem>>, vector<32x96xbf16>
      tpu.vector_store %arg5[%c0_12, %c0_13], %13 {strides = array<i32>} : memref<32x96xbf16, #tpu.memory_space<vmem>>, vector<32x96xbf16>,
    } else {
    }
    return
  }
  func.func @transform_0(%arg0: i32, %arg1: i32, %arg2: i32) -> (i32, i32) {
    %c0_i32 = arith.constant 0 : i32
    return %arg0, %arg2 : i32, i32
  }
  func.func @transform_1(%arg0: i32, %arg1: i32, %arg2: i32) -> (i32, i32) {
    %c0_i32 = arith.constant 0 : i32
    return %arg2, %arg1 : i32, i32
  }
  func.func @transform_2(%arg0: i32, %arg1: i32, %arg2: i32) -> (i32, i32) {
    %c0_i32 = arith.constant 0 : i32
    return %arg0, %arg1 : i32, i32
  }
}

module attributes {stable_mosaic.version = 11 : i64} {
  func.func @_flash_attn_kernel(%arg0: i32, %arg1: i32, %arg2: i32, %arg3: i32, %arg4: memref<1x1x16x8xbf16, #tpu.memory_space<vmem>>, %arg5: memref<1x1x16x8xbf16, #tpu.memory_space<vmem>>, %arg6: memref<1x1x16x8xbf16, #tpu.memory_space<vmem>>, %arg7: memref<16x8xf32, #tpu.memory_space<vmem>>, %arg8: memref<16x8xf32, #tpu.memory_space<vmem>>, %arg9: memref<16x8xf32, #tpu.memory_space<vmem>>, %arg10: memref<16x8xf32, #tpu.memory_space<vmem>>, %arg11: memref<1x8xf32, #tpu.memory_space<vmem>>, %arg12: memref<1x8xf32, #tpu.memory_space<vmem>>, %arg13: memref<1x1x16x8xbf16, #tpu.memory_space<vmem>>, %arg14: memref<16x8xbf16, #tpu.memory_space<vmem>>, %arg15: memref<16x1xf32, #tpu.memory_space<vmem>>, %arg16: memref<16x1xf32, #tpu.memory_space<vmem>>, %arg17: memref<16x8xf32, #tpu.memory_space<vmem>>) attributes {dimension_semantics = [#tpu.dimension_semantics<parallel>, #tpu.dimension_semantics<parallel>, #tpu.dimension_semantics<parallel>, #tpu.dimension_semantics<arbitrary>], iteration_bounds = array<i64: 2, 4, 1, 1>, scalar_prefetch = 0 : i64, scratch_operands = 4 : i64, tpu.core_type = #tpu.core_type<tc>, window_params = [{transform_indices = @transform_0, window_bounds = array<i64: 1, 1, 16, 8>}, {transform_indices = @transform_1, window_bounds = array<i64: 1, 1, 16, 8>}, {transform_indices = @transform_2, window_bounds = array<i64: 1, 1, 16, 8>}, {transform_indices = @transform_3, window_bounds = array<i64: 16, 8>}, {transform_indices = @transform_4, window_bounds = array<i64: 16, 8>}, {transform_indices = @transform_5, window_bounds = array<i64: 16, 8>}, {transform_indices = @transform_6, window_bounds = array<i64: 16, 8>}, {pipeline_mode = #tpu.pipeline_mode<synchronous>, transform_indices = @transform_7, window_bounds = array<i64: 1, 8>}, {pipeline_mode = #tpu.pipeline_mode<synchronous>, transform_indices = @transform_8, window_bounds = array<i64: 1, 8>}, {transform_indices = @transform_9, window_bounds = array<i64: 1, 1, 16, 8>}]} {
    %c0_i32 = arith.constant 0 : i32
    %0 = arith.cmpi eq, %arg3, %c0_i32 : i32
    %1 = arith.extui %0 : i1 to i32
    %c0_i32_0 = arith.constant 0 : i32
    %2 = arith.cmpi ne, %1, %c0_i32_0 : i32
    scf.if %2 {
      %c0_36 = arith.constant 0 : index
      %c0_37 = arith.constant 0 : index
      %c0_38 = arith.constant 0 : index
      %c0_39 = arith.constant 0 : index
      %65 = vector.load %arg4[%c0_36, %c0_37, %c0_38, %c0_39] : memref<1x1x16x8xbf16, #tpu.memory_space<vmem>>, vector<1x1x16x8xbf16>
      %66 = vector.shape_cast %65 : vector<1x1x16x8xbf16> to vector<16x8xbf16>
      %c0_40 = arith.constant 0 : index
      %c0_41 = arith.constant 0 : index
      %67 = vector.load %arg11[%c0_40, %c0_41] : memref<1x8xf32, #tpu.memory_space<vmem>>, vector<1x8xf32>
      %c0_42 = arith.constant 0 : index
      %c0_43 = arith.constant 0 : index
      %68 = vector.load %arg7[%c0_42, %c0_43] : memref<16x8xf32, #tpu.memory_space<vmem>>, vector<16x8xf32>
      %c0_44 = arith.constant 0 : index
      %c0_45 = arith.constant 0 : index
      %69 = vector.load %arg8[%c0_44, %c0_45] : memref<16x8xf32, #tpu.memory_space<vmem>>, vector<16x8xf32>
      %70 = arith.extf %66 : vector<16x8xbf16> to vector<16x8xf32>
      %71 = arith.mulf %70, %70 : vector<16x8xf32>
      %cst_46 = arith.constant dense<0.000000e+00> : vector<16xf32>
      %72 = vector.multi_reduction <add>, %71, %cst_46 [1] : vector<16x8xf32> to vector<16xf32>
      %73 = vector.shape_cast %72 : vector<16xf32> to vector<16x1xf32>
      %cst_47 = arith.constant 8.000000e+00 : f32
      %74 = vector.broadcast %cst_47 : f32 to vector<16x1xf32>
      %75 = arith.divf %73, %74 : vector<16x1xf32>
      %cst_48 = arith.constant 9.99999997E-7 : f32
      %76 = vector.broadcast %cst_48 : f32 to vector<16x1xf32>
      %77 = arith.addf %75, %76 : vector<16x1xf32>
      %78 = math.rsqrt %77 : vector<16x1xf32>
      %79 = vector.broadcast %78 : vector<16x1xf32> to vector<16x8xf32>
      %80 = arith.mulf %70, %79 : vector<16x8xf32>
      %81 = vector.broadcast %67 : vector<1x8xf32> to vector<16x8xf32>
      %82 = arith.mulf %80, %81 : vector<16x8xf32>
      %83 = vector.extract_strided_slice %82 {offsets = [0, 0], sizes = [16, 4], strides = [1, 1]} : vector<16x8xf32> to vector<16x4xf32>
      %84 = vector.extract_strided_slice %82 {offsets = [0, 4], sizes = [16, 4], strides = [1, 1]} : vector<16x8xf32> to vector<16x4xf32>
      %85 = vector.extract_strided_slice %68 {offsets = [0, 0], sizes = [16, 4], strides = [1, 1]} : vector<16x8xf32> to vector<16x4xf32>
      %86 = arith.mulf %85, %83 : vector<16x4xf32>
      %87 = vector.extract_strided_slice %69 {offsets = [0, 0], sizes = [16, 4], strides = [1, 1]} : vector<16x8xf32> to vector<16x4xf32>
      %88 = arith.mulf %87, %84 : vector<16x4xf32>
      %89 = arith.addf %86, %88 : vector<16x4xf32>
      %90 = vector.extract_strided_slice %69 {offsets = [0, 4], sizes = [16, 4], strides = [1, 1]} : vector<16x8xf32> to vector<16x4xf32>
      %91 = arith.mulf %90, %83 : vector<16x4xf32>
      %92 = vector.extract_strided_slice %68 {offsets = [0, 4], sizes = [16, 4], strides = [1, 1]} : vector<16x8xf32> to vector<16x4xf32>
      %93 = arith.mulf %92, %84 : vector<16x4xf32>
      %94 = arith.addf %91, %93 : vector<16x4xf32>
      %95 = tpu.concatenate %89, %94 in 1 : vector<16x4xf32>, vector<16x4xf32> -> vector<16x8xf32>
      %96 = arith.truncf %95 : vector<16x8xf32> to vector<16x8xbf16>
      %c0_49 = arith.constant 0 : index
      %c0_50 = arith.constant 0 : index
      %97 = vector.load %arg14[%c0_49, %c0_50] : memref<16x8xbf16, #tpu.memory_space<vmem>>, vector<16x8xbf16>
      tpu.vector_store %arg14[%c0_49, %c0_50], %96 {strides = array<i32>} : memref<16x8xbf16, #tpu.memory_space<vmem>>, vector<16x8xbf16>,
      %cst_51 = arith.constant 0xFF800000 : f32
      %98 = vector.broadcast %cst_51 : f32 to vector<16x1xf32>
      %c0_52 = arith.constant 0 : index
      %c0_53 = arith.constant 0 : index
      %99 = vector.load %arg15[%c0_52, %c0_53] : memref<16x1xf32, #tpu.memory_space<vmem>>, vector<16x1xf32>
      tpu.vector_store %arg15[%c0_52, %c0_53], %98 {strides = array<i32>} : memref<16x1xf32, #tpu.memory_space<vmem>>, vector<16x1xf32>,
      %cst_54 = arith.constant 0.000000e+00 : f32
      %100 = vector.broadcast %cst_54 : f32 to vector<16x1xf32>
      %c0_55 = arith.constant 0 : index
      %c0_56 = arith.constant 0 : index
      %101 = vector.load %arg16[%c0_55, %c0_56] : memref<16x1xf32, #tpu.memory_space<vmem>>, vector<16x1xf32>
      tpu.vector_store %arg16[%c0_55, %c0_56], %100 {strides = array<i32>} : memref<16x1xf32, #tpu.memory_space<vmem>>, vector<16x1xf32>,
      %cst_57 = arith.constant 0.000000e+00 : f32
      %102 = vector.broadcast %cst_57 : f32 to vector<16x8xf32>
      %c0_58 = arith.constant 0 : index
      %c0_59 = arith.constant 0 : index
      %103 = vector.load %arg17[%c0_58, %c0_59] : memref<16x8xf32, #tpu.memory_space<vmem>>, vector<16x8xf32>
      tpu.vector_store %arg17[%c0_58, %c0_59], %102 {strides = array<i32>} : memref<16x8xf32, #tpu.memory_space<vmem>>, vector<16x8xf32>,
    } else {
    }
    %c0 = arith.constant 0 : index
    %c0_1 = arith.constant 0 : index
    %c0_2 = arith.constant 0 : index
    %c0_3 = arith.constant 0 : index
    %3 = vector.load %arg5[%c0, %c0_1, %c0_2, %c0_3] : memref<1x1x16x8xbf16, #tpu.memory_space<vmem>>, vector<1x1x16x8xbf16>
    %4 = vector.shape_cast %3 : vector<1x1x16x8xbf16> to vector<16x8xbf16>
    %c0_4 = arith.constant 0 : index
    %c0_5 = arith.constant 0 : index
    %5 = vector.load %arg12[%c0_4, %c0_5] : memref<1x8xf32, #tpu.memory_space<vmem>>, vector<1x8xf32>
    %c0_6 = arith.constant 0 : index
    %c0_7 = arith.constant 0 : index
    %6 = vector.load %arg9[%c0_6, %c0_7] : memref<16x8xf32, #tpu.memory_space<vmem>>, vector<16x8xf32>
    %c0_8 = arith.constant 0 : index
    %c0_9 = arith.constant 0 : index
    %7 = vector.load %arg10[%c0_8, %c0_9] : memref<16x8xf32, #tpu.memory_space<vmem>>, vector<16x8xf32>
    %8 = arith.extf %4 : vector<16x8xbf16> to vector<16x8xf32>
    %9 = arith.mulf %8, %8 : vector<16x8xf32>
    %cst = arith.constant dense<0.000000e+00> : vector<16xf32>
    %10 = vector.multi_reduction <add>, %9, %cst [1] : vector<16x8xf32> to vector<16xf32>
    %11 = vector.shape_cast %10 : vector<16xf32> to vector<16x1xf32>
    %cst_10 = arith.constant 8.000000e+00 : f32
    %12 = vector.broadcast %cst_10 : f32 to vector<16x1xf32>
    %13 = arith.divf %11, %12 : vector<16x1xf32>
    %cst_11 = arith.constant 9.99999997E-7 : f32
    %14 = vector.broadcast %cst_11 : f32 to vector<16x1xf32>
    %15 = arith.addf %13, %14 : vector<16x1xf32>
    %16 = math.rsqrt %15 : vector<16x1xf32>
    %17 = vector.broadcast %16 : vector<16x1xf32> to vector<16x8xf32>
    %18 = arith.mulf %8, %17 : vector<16x8xf32>
    %19 = vector.broadcast %5 : vector<1x8xf32> to vector<16x8xf32>
    %20 = arith.mulf %18, %19 : vector<16x8xf32>
    %21 = vector.extract_strided_slice %20 {offsets = [0, 0], sizes = [16, 4], strides = [1, 1]} : vector<16x8xf32> to vector<16x4xf32>
    %22 = vector.extract_strided_slice %20 {offsets = [0, 4], sizes = [16, 4], strides = [1, 1]} : vector<16x8xf32> to vector<16x4xf32>
    %23 = vector.extract_strided_slice %6 {offsets = [0, 0], sizes = [16, 4], strides = [1, 1]} : vector<16x8xf32> to vector<16x4xf32>
    %24 = arith.mulf %23, %21 : vector<16x4xf32>
    %25 = vector.extract_strided_slice %7 {offsets = [0, 0], sizes = [16, 4], strides = [1, 1]} : vector<16x8xf32> to vector<16x4xf32>
    %26 = arith.mulf %25, %22 : vector<16x4xf32>
    %27 = arith.addf %24, %26 : vector<16x4xf32>
    %28 = vector.extract_strided_slice %7 {offsets = [0, 4], sizes = [16, 4], strides = [1, 1]} : vector<16x8xf32> to vector<16x4xf32>
    %29 = arith.mulf %28, %21 : vector<16x4xf32>
    %30 = vector.extract_strided_slice %6 {offsets = [0, 4], sizes = [16, 4], strides = [1, 1]} : vector<16x8xf32> to vector<16x4xf32>
    %31 = arith.mulf %30, %22 : vector<16x4xf32>
    %32 = arith.addf %29, %31 : vector<16x4xf32>
    %33 = tpu.concatenate %27, %32 in 1 : vector<16x4xf32>, vector<16x4xf32> -> vector<16x8xf32>
    %34 = arith.truncf %33 : vector<16x8xf32> to vector<16x8xbf16>
    %c0_12 = arith.constant 0 : index
    %c0_13 = arith.constant 0 : index
    %35 = vector.load %arg14[%c0_12, %c0_13] : memref<16x8xbf16, #tpu.memory_space<vmem>>, vector<16x8xbf16>
    %cst_14 = arith.constant dense<0.000000e+00> : vector<16x16xf32>
    %36 = tpu.matmul %35, %34, %cst_14 {dimension_numbers = #tpu.dot_dimension_numbers<[1], [1], [0], [0], [0, 0, 1, 0], [], []>} : vector<16x8xbf16>, vector<16x8xbf16>, vector<16x16xf32> -> vector<16x16xf32>
    %c0_15 = arith.constant 0 : index
    %c0_16 = arith.constant 0 : index
    %37 = vector.load %arg15[%c0_15, %c0_16] : memref<16x1xf32, #tpu.memory_space<vmem>>, vector<16x1xf32>
    %cst_17 = arith.constant dense<0xFF800000> : vector<16xf32>
    %38 = vector.multi_reduction <maximumf>, %36, %cst_17 [1] : vector<16x16xf32> to vector<16xf32>
    %39 = vector.shape_cast %38 : vector<16xf32> to vector<16x1xf32>
    %40 = arith.maximumf %37, %39 : vector<16x1xf32>
    %41 = arith.subf %37, %40 : vector<16x1xf32>
    %42 = math.exp %41 : vector<16x1xf32>
    %43 = vector.broadcast %40 : vector<16x1xf32> to vector<16x16xf32>
    %44 = arith.subf %36, %43 : vector<16x16xf32>
    %45 = math.exp %44 : vector<16x16xf32>
    %c0_18 = arith.constant 0 : index
    %c0_19 = arith.constant 0 : index
    %46 = vector.load %arg16[%c0_18, %c0_19] : memref<16x1xf32, #tpu.memory_space<vmem>>, vector<16x1xf32>
    %47 = arith.mulf %42, %46 : vector<16x1xf32>
    %cst_20 = arith.constant dense<0.000000e+00> : vector<16xf32>
    %48 = vector.multi_reduction <add>, %45, %cst_20 [1] : vector<16x16xf32> to vector<16xf32>
    %49 = vector.shape_cast %48 : vector<16xf32> to vector<16x1xf32>
    %50 = arith.addf %47, %49 : vector<16x1xf32>
    %c0_21 = arith.constant 0 : index
    %c0_22 = arith.constant 0 : index
    %51 = vector.load %arg16[%c0_21, %c0_22] : memref<16x1xf32, #tpu.memory_space<vmem>>, vector<16x1xf32>
    tpu.vector_store %arg16[%c0_21, %c0_22], %50 {strides = array<i32>} : memref<16x1xf32, #tpu.memory_space<vmem>>, vector<16x1xf32>,
    %c0_23 = arith.constant 0 : index
    %c0_24 = arith.constant 0 : index
    %52 = vector.load %arg17[%c0_23, %c0_24] : memref<16x8xf32, #tpu.memory_space<vmem>>, vector<16x8xf32>
    %53 = vector.broadcast %42 : vector<16x1xf32> to vector<16x8xf32>
    %54 = arith.mulf %53, %52 : vector<16x8xf32>
    %55 = arith.truncf %45 : vector<16x16xf32> to vector<16x16xbf16>
    %c0_25 = arith.constant 0 : index
    %c0_26 = arith.constant 0 : index
    %c0_27 = arith.constant 0 : index
    %c0_28 = arith.constant 0 : index
    %56 = vector.load %arg6[%c0_25, %c0_26, %c0_27, %c0_28] : memref<1x1x16x8xbf16, #tpu.memory_space<vmem>>, vector<1x1x16x8xbf16>
    %57 = vector.shape_cast %56 : vector<1x1x16x8xbf16> to vector<16x8xbf16>
    %cst_29 = arith.constant dense<0.000000e+00> : vector<16x8xf32>
    %58 = tpu.matmul %55, %57, %cst_29 {dimension_numbers = #tpu.dot_dimension_numbers<[1], [0], [0], [1], [0, 0, 1, 1], [], []>} : vector<16x16xbf16>, vector<16x8xbf16>, vector<16x8xf32> -> vector<16x8xf32>
    %59 = arith.addf %54, %58 : vector<16x8xf32>
    %c0_30 = arith.constant 0 : index
    %c0_31 = arith.constant 0 : index
    %60 = vector.load %arg17[%c0_30, %c0_31] : memref<16x8xf32, #tpu.memory_space<vmem>>, vector<16x8xf32>
    tpu.vector_store %arg17[%c0_30, %c0_31], %59 {strides = array<i32>} : memref<16x8xf32, #tpu.memory_space<vmem>>, vector<16x8xf32>,
    %c0_32 = arith.constant 0 : index
    %c0_33 = arith.constant 0 : index
    %61 = vector.load %arg15[%c0_32, %c0_33] : memref<16x1xf32, #tpu.memory_space<vmem>>, vector<16x1xf32>
    tpu.vector_store %arg15[%c0_32, %c0_33], %40 {strides = array<i32>} : memref<16x1xf32, #tpu.memory_space<vmem>>, vector<16x1xf32>,
    %c0_i32_34 = arith.constant 0 : i32
    %62 = arith.cmpi eq, %arg3, %c0_i32_34 : i32
    %63 = arith.extui %62 : i1 to i32
    %c0_i32_35 = arith.constant 0 : i32
    %64 = arith.cmpi ne, %63, %c0_i32_35 : i32
    scf.if %64 {
      %c0_36 = arith.constant 0 : index
      %c0_37 = arith.constant 0 : index
      %65 = vector.load %arg17[%c0_36, %c0_37] : memref<16x8xf32, #tpu.memory_space<vmem>>, vector<16x8xf32>
      %c0_38 = arith.constant 0 : index
      %c0_39 = arith.constant 0 : index
      %66 = vector.load %arg16[%c0_38, %c0_39] : memref<16x1xf32, #tpu.memory_space<vmem>>, vector<16x1xf32>
      %67 = tpu.reciprocal %66 {approx = true} : vector<16x1xf32> -> vector<16x1xf32>
      %68 = vector.broadcast %67 : vector<16x1xf32> to vector<16x8xf32>
      %69 = arith.mulf %65, %68 : vector<16x8xf32>
      %70 = arith.truncf %69 : vector<16x8xf32> to vector<16x8xbf16>
      %c0_40 = arith.constant 0 : index
      %c0_41 = arith.constant 0 : index
      %c0_42 = arith.constant 0 : index
      %c0_43 = arith.constant 0 : index
      %71 = vector.load %arg13[%c0_40, %c0_41, %c0_42, %c0_43] : memref<1x1x16x8xbf16, #tpu.memory_space<vmem>>, vector<1x1x16x8xbf16>
      %72 = vector.shape_cast %71 : vector<1x1x16x8xbf16> to vector<16x8xbf16>
      %73 = vector.shape_cast %70 : vector<16x8xbf16> to vector<1x1x16x8xbf16>
      tpu.vector_store %arg13[%c0_40, %c0_41, %c0_42, %c0_43], %73 {strides = array<i32>} : memref<1x1x16x8xbf16, #tpu.memory_space<vmem>>, vector<1x1x16x8xbf16>,
    } else {
    }
    return
  }
  func.func @transform_0(%arg0: i32, %arg1: i32, %arg2: i32, %arg3: i32) -> (i32, i32, i32, i32) {
    %c0_i32 = arith.constant 0 : i32
    %c0_i32_0 = arith.constant 0 : i32
    return %arg0, %arg1, %arg2, %c0_i32 : i32, i32, i32, i32
  }
  func.func @transform_1(%arg0: i32, %arg1: i32, %arg2: i32, %arg3: i32) -> (i32, i32, i32, i32) {
    %c0_i32 = arith.constant 0 : i32
    %c0_i32_0 = arith.constant 0 : i32
    return %arg0, %arg1, %arg3, %c0_i32 : i32, i32, i32, i32
  }
  func.func @transform_2(%arg0: i32, %arg1: i32, %arg2: i32, %arg3: i32) -> (i32, i32, i32, i32) {
    %c0_i32 = arith.constant 0 : i32
    %c0_i32_0 = arith.constant 0 : i32
    return %arg0, %arg1, %arg3, %c0_i32 : i32, i32, i32, i32
  }
  func.func @transform_3(%arg0: i32, %arg1: i32, %arg2: i32, %arg3: i32) -> (i32, i32) {
    %c0_i32 = arith.constant 0 : i32
    %c0_i32_0 = arith.constant 0 : i32
    return %arg2, %c0_i32 : i32, i32
  }
  func.func @transform_4(%arg0: i32, %arg1: i32, %arg2: i32, %arg3: i32) -> (i32, i32) {
    %c0_i32 = arith.constant 0 : i32
    %c0_i32_0 = arith.constant 0 : i32
    return %arg2, %c0_i32 : i32, i32
  }
  func.func @transform_5(%arg0: i32, %arg1: i32, %arg2: i32, %arg3: i32) -> (i32, i32) {
    %c0_i32 = arith.constant 0 : i32
    %c0_i32_0 = arith.constant 0 : i32
    return %arg3, %c0_i32 : i32, i32
  }
  func.func @transform_6(%arg0: i32, %arg1: i32, %arg2: i32, %arg3: i32) -> (i32, i32) {
    %c0_i32 = arith.constant 0 : i32
    %c0_i32_0 = arith.constant 0 : i32
    return %arg3, %c0_i32 : i32, i32
  }
  func.func @transform_7(%arg0: i32, %arg1: i32, %arg2: i32, %arg3: i32) -> (i32, i32) {
    %c0_i32 = arith.constant 0 : i32
    %c0_i32_0 = arith.constant 0 : i32
    %c0_i32_1 = arith.constant 0 : i32
    return %c0_i32, %c0_i32_0 : i32, i32
  }
  func.func @transform_8(%arg0: i32, %arg1: i32, %arg2: i32, %arg3: i32) -> (i32, i32) {
    %c0_i32 = arith.constant 0 : i32
    %c0_i32_0 = arith.constant 0 : i32
    %c0_i32_1 = arith.constant 0 : i32
    return %c0_i32, %c0_i32_0 : i32, i32
  }
  func.func @transform_9(%arg0: i32, %arg1: i32, %arg2: i32, %arg3: i32) -> (i32, i32, i32, i32) {
    %c0_i32 = arith.constant 0 : i32
    %c0_i32_0 = arith.constant 0 : i32
    return %arg0, %arg1, %arg2, %c0_i32 : i32, i32, i32, i32
  }
}

module attributes {stable_mosaic.version = 11 : i64} {
  func.func @_matmul_kernel(%arg0: i32, %arg1: i32, %arg2: i32, %arg3: memref<32x32xbf16, #tpu.memory_space<vmem>>, %arg4: memref<32x32xbf16, #tpu.memory_space<vmem>>, %arg5: memref<32x32xf32, #tpu.memory_space<vmem>>, %arg6: memref<32x32xf32, #tpu.memory_space<vmem>>) attributes {dimension_semantics = [#tpu.dimension_semantics<parallel>, #tpu.dimension_semantics<parallel>, #tpu.dimension_semantics<arbitrary>], iteration_bounds = array<i64: 1, 1, 1>, scalar_prefetch = 0 : i64, scratch_operands = 1 : i64, tpu.core_type = #tpu.core_type<tc>, window_params = [{transform_indices = @transform_0, window_bounds = array<i64: 32, 32>}, {transform_indices = @transform_1, window_bounds = array<i64: 32, 32>}, {transform_indices = @transform_2, window_bounds = array<i64: 32, 32>}]} {
    %c0_i32 = arith.constant 0 : i32
    %0 = arith.cmpi eq, %arg2, %c0_i32 : i32
    %1 = arith.extui %0 : i1 to i32
    %c0_i32_0 = arith.constant 0 : i32
    %2 = arith.cmpi ne, %1, %c0_i32_0 : i32
    scf.if %2 {
      %cst_10 = arith.constant 0.000000e+00 : f32
      %12 = vector.broadcast %cst_10 : f32 to vector<32x32xf32>
      %c0_11 = arith.constant 0 : index
      %c0_12 = arith.constant 0 : index
      %13 = vector.load %arg6[%c0_11, %c0_12] : memref<32x32xf32, #tpu.memory_space<vmem>>, vector<32x32xf32>
      tpu.vector_store %arg6[%c0_11, %c0_12], %12 {strides = array<i32>} : memref<32x32xf32, #tpu.memory_space<vmem>>, vector<32x32xf32>,
    } else {
    }
    %c0 = arith.constant 0 : index
    %c0_1 = arith.constant 0 : index
    %3 = vector.load %arg6[%c0, %c0_1] : memref<32x32xf32, #tpu.memory_space<vmem>>, vector<32x32xf32>
    %c0_2 = arith.constant 0 : index
    %c0_3 = arith.constant 0 : index
    %4 = vector.load %arg3[%c0_2, %c0_3] : memref<32x32xbf16, #tpu.memory_space<vmem>>, vector<32x32xbf16>
    %c0_4 = arith.constant 0 : index
    %c0_5 = arith.constant 0 : index
    %5 = vector.load %arg4[%c0_4, %c0_5] : memref<32x32xbf16, #tpu.memory_space<vmem>>, vector<32x32xbf16>
    %cst = arith.constant dense<0.000000e+00> : vector<32x32xf32>
    %6 = tpu.matmul %4, %5, %cst {dimension_numbers = #tpu.dot_dimension_numbers<[1], [0], [0], [1], [0, 0, 1, 1], [], []>} : vector<32x32xbf16>, vector<32x32xbf16>, vector<32x32xf32> -> vector<32x32xf32>
    %7 = arith.addf %3, %6 : vector<32x32xf32>
    %c0_6 = arith.constant 0 : index
    %c0_7 = arith.constant 0 : index
    %8 = vector.load %arg6[%c0_6, %c0_7] : memref<32x32xf32, #tpu.memory_space<vmem>>, vector<32x32xf32>
    tpu.vector_store %arg6[%c0_6, %c0_7], %7 {strides = array<i32>} : memref<32x32xf32, #tpu.memory_space<vmem>>, vector<32x32xf32>,
    %c0_i32_8 = arith.constant 0 : i32
    %9 = arith.cmpi eq, %arg2, %c0_i32_8 : i32
    %10 = arith.extui %9 : i1 to i32
    %c0_i32_9 = arith.constant 0 : i32
    %11 = arith.cmpi ne, %10, %c0_i32_9 : i32
    scf.if %11 {
      %c0_10 = arith.constant 0 : index
      %c0_11 = arith.constant 0 : index
      %12 = vector.load %arg6[%c0_10, %c0_11] : memref<32x32xf32, #tpu.memory_space<vmem>>, vector<32x32xf32>
      %c0_12 = arith.constant 0 : index
      %c0_13 = arith.constant 0 : index
      %13 = vector.load %arg5[%c0_12, %c0_13] : memref<32x32xf32, #tpu.memory_space<vmem>>, vector<32x32xf32>
      tpu.vector_store %arg5[%c0_12, %c0_13], %12 {strides = array<i32>} : memref<32x32xf32, #tpu.memory_space<vmem>>, vector<32x32xf32>,
    } else {
    }
    return
  }
  func.func @transform_0(%arg0: i32, %arg1: i32, %arg2: i32) -> (i32, i32) {
    %c0_i32 = arith.constant 0 : i32
    return %arg0, %arg2 : i32, i32
  }
  func.func @transform_1(%arg0: i32, %arg1: i32, %arg2: i32) -> (i32, i32) {
    %c0_i32 = arith.constant 0 : i32
    return %arg2, %arg1 : i32, i32
  }
  func.func @transform_2(%arg0: i32, %arg1: i32, %arg2: i32) -> (i32, i32) {
    %c0_i32 = arith.constant 0 : i32
    return %arg0, %arg1 : i32, i32
  }
}

</mosaic_0001>

<bundles_post_ra>
// kernel: flash_self_mha_forward.3
= control target key start
LH: loop header
LB: loop body
LE: loop exit
PB: predicated region body
PF: predicated region fallthrough
CT: control target
= control target key end

     0   :  { %vm16_vm0 = vcmask 785408   ;;  %v183_v1 = vmov 0.0   ;;  %vm55_vm1 = vcmask 261120   ;;  %vm143_vm2 = vcmask 781312   ;;  %s231_s1 = inlined_call_operand.vmem [shape: bf16[32,96], index: 1, kind: input, shape index: {}]   ;;  %s232_s0 = inlined_call_operand.vmem [shape: bf16[32,32], index: 0, kind: input, shape index: {}]   ;;  %s233_s2 = inlined_call_operand.vmem [shape: bf16[32,96], index: 2, kind: output, shape index: {}]  }
   0x1   :  { %v179_v0 = vld [vmem:[%s231_s1 + $0x8] sm:$0xff]   ;;  %19 = vst.msk [vmem:[#allocation2 + $0x10] sm:$0xff] %vm16_vm0, %v183_v1  ;;  %17 = vst.msk [vmem:[#allocation2] sm:$0xff] %vm16_vm0, %v183_v1  ;;  %v180_v2 = vld [vmem:[%s231_s1] sm:$0xff]  }
   0x2   :  { %18 = vst.msk [vmem:[#allocation2 + $0x8] sm:$0xff] %vm16_vm0, %v183_v1  ;;  %20 = vst.msk [vmem:[#allocation2 + $0x18] sm:$0xff] %vm16_vm0, %v183_v1  ;;  %170 = vmatprep.subr.bf16.mxu0 %v179_v0  ;;  %v181_v3 = vld [vmem:[%s232_s0] sm:$0xff]   ;;  %v182_v4 = vld [vmem:[%s232_s0 + $0x8] sm:$0xff]  }
   0x3   :  { %171 = vmatpush3.bf16.msra.mxu0 %v179_v0  ;;  %174 = vmatprep.mubr.msk.bf16.mxu0 %vm55_vm1, %v181_v3 }
   0x4   :  { %172 = vmatprep.subr.bf16.mxu0 %v180_v2 }
   0x7   :  { %173 = vmatpush3.bf16.msra.mxu0 %v180_v2 }
   0x8   :  { %v23_v5 = vld [vmem:[#allocation2 + $0x10] sm:$0xff]  ;;  %v21_v7 = vld [vmem:[#allocation2] sm:$0xff] }
   0x9   :  { %v24_v10 = vld [vmem:[#allocation2 + $0x18] sm:$0xff]  ;;  %v22_v13 = vld [vmem:[#allocation2 + $0x8] sm:$0xff] }
   0xa   :  { %175 = vmatmul.mubr.msk.bf16.vlgmr.msra.gmra.mxu0 %vm55_vm1, %v182_v4 }
  0xca   :  { %v176_v6 = vpop.f32.mrf.mxu0 }
  0xcb   :  { %v113_v8 = vadd.f32 %v176_v6, %v23_v5 }
  0xcc   :  { %v96_v9 = vpop.f32.mrf.mxu0 }
  0xcd   :  { %118 = vst.msk [vmem:[#allocation2 + $0x10] sm:$0xff] %vm16_vm0, %v113_v8  ;;  %v111_v11 = vadd.f32 %v96_v9, %v21_v7 }
  0xce   :  { %v177_v12 = vpop.f32.mrf.mxu0 }
  0xcf   :  { %116 = vst.msk [vmem:[#allocation2] sm:$0xff] %vm16_vm0, %v111_v11  ;;  %v114_v14 = vadd.f32 %v177_v12, %v24_v10 }
  0xd0   :  { %v99_v15 = vpop.f32.mrf.mxu0 }
  0xd1   :  { %119 = vst.msk [vmem:[#allocation2 + $0x18] sm:$0xff] %vm16_vm0, %v114_v14  ;;  %v112_v16 = vadd.f32 %v99_v15, %v22_v13 }
  0xd3   :  { %117 = vst.msk [vmem:[#allocation2 + $0x8] sm:$0xff] %vm16_vm0, %v112_v16 }
  0xd4   :  { %v125_v17 = vld [vmem:[#allocation2 + $0x10] sm:$0xff] }
  0xd5   :  { %v164_v18 = vpack.c.bf16 %v125_v17, %v125_v17 }
  0xd6   :  { %v123_v19 = vld [vmem:[#allocation2] sm:$0xff] }
  0xd7   :  { %146 = vst.msk [vmem:[%s233_s2 + $0x8] sm:$0xf] %vm143_vm2, %v164_v18  ;;  %v162_v20 = vpack.c.bf16 %v123_v19, %v123_v19 }
  0xd8   :  { %v126_v21 = vld [vmem:[#allocation2 + $0x18] sm:$0xff] }
  0xd9   :  { %144 = vst.msk [vmem:[%s233_s2] sm:$0xf] %vm143_vm2, %v162_v20  ;;  %v165_v22 = vpack.c.bf16 %v126_v21, %v126_v21 }
  0xda   :  { %v124_v23 = vld [vmem:[#allocation2 + $0x8] sm:$0xff] }
  0xdb   :  { %147 = vst.msk [vmem:[%s233_s2 + $0xc] sm:$0xf] %vm143_vm2, %v165_v22  ;;  %v163_v24 = vpack.c.bf16 %v124_v23, %v124_v23 }
  0xdd   :  { %145 = vst.msk [vmem:[%s233_s2 + $0x4] sm:$0xf] %vm143_vm2, %v163_v24 }

// kernel: flash_self_mha_forward.5
= control target key start
LH: loop header
LB: loop body
LE: loop exit
PB: predicated region body
PF: predicated region fallthrough
CT: control target
= control target key end

     0   :  { %vm17_vm0 = vcmask 261120   ;;  %v195_v3 = vmov 0.0   ;;  %s243_s0 = inlined_call_operand.vmem [shape: bf16[32,32], index: 0, kind: input, shape index: {}]   ;;  %s244_s1 = inlined_call_operand.vmem [shape: bf16[32,32], index: 1, kind: input, shape index: {}]   ;;  %s245_s2 = inlined_call_operand.hbm [shape: f32[32,32], index: 2, kind: output, shape index: {}]  }
   0x1   :  { %v169_v0 = vld [vmem:[%s244_s1 + $0x8] sm:$0xff]   ;;  %v170_v1 = vld [vmem:[%s244_s1] sm:$0xff]   ;;  %20 = vst.msk [vmem:[#allocation2 + $0x10] sm:$0xff] %vm17_vm0, %v195_v3  ;;  %18 = vst.msk [vmem:[#allocation2] sm:$0xff] %vm17_vm0, %v195_v3 }
   0x2   :  { %157 = vmatprep.subr.bf16.mxu0 %v169_v0  ;;  %v171_v2 = vld [vmem:[%s243_s0] sm:$0xff]   ;;  %19 = vst.msk [vmem:[#allocation2 + $0x8] sm:$0xff] %vm17_vm0, %v195_v3  ;;  %21 = vst.msk [vmem:[#allocation2 + $0x18] sm:$0xff] %vm17_vm0, %v195_v3 }
   0x3   :  { %158 = vmatpush3.bf16.msra.mxu0 %v169_v0  ;;  %161 = vmatprep.mubr.msk.bf16.mxu0 %vm17_vm0, %v171_v2 }
   0x4   :  { %159 = vmatprep.subr.bf16.mxu0 %v170_v1 }
   0x5   :  { %7 = vsyncpa [#allocation4], 0  ;;  %v172_v4 = vld [vmem:[%s243_s0 + $0x8] sm:$0xff]   ;;  %s196_s0 = smov [#allocation3]  }
   0x6   :  { %s136_s16 = sshll.u32 %s196_s0, 4  ;;  %s137_s16 = int_to_ptr.vmem [resolvable:$true] %s136_s16 }
   0x7   :  { %160 = vmatpush3.bf16.msra.mxu0 %v170_v1  ;;  %s173_s17 = scalar_lea.vmem %s137_s16, 512  ;;  %p178_p1 = scmp.lt.s32.totalorder %s137_s16, %s137_s16 }
   0x8   :  { %v24_v5 = vld [vmem:[#allocation2 + $0x10] sm:$0xff]  ;;  %v22_v7 = vld [vmem:[#allocation2] sm:$0xff]  ;;  %p174_p0 = scmp.ne.s32.totalorder %s137_s16, %s173_s17  ;;  %p179_p2 = scmp.lt.s32.totalorder %s173_s17, %s173_s17 }
   0x9   :  { %v25_v10 = vld [vmem:[#allocation2 + $0x18] sm:$0xff]  ;;  %v23_v13 = vld [vmem:[#allocation2 + $0x8] sm:$0xff] }
   0xa   :  { %162 = vmatmul.mubr.msk.bf16.vlgmr.msra.gmra.mxu0 %vm17_vm0, %v172_v4  ;;  %p180_p3 = por %p179_p2, %p178_p1 }
   0xc   :  { %p181_p4 = pnand %p180_p3, %p174_p0 }
  0xca   :  { %v163_v6 = vpop.f32.mrf.mxu0 }
  0xcb   :  { %v114_v8 = vadd.f32 %v163_v6, %v24_v5 }
  0xcc   :  { %v97_v9 = vpop.f32.mrf.mxu0 }
  0xcd   :  { %118 = vst.msk [vmem:[#allocation2 + $0x10] sm:$0xff] %vm17_vm0, %v114_v8  ;;  %v112_v11 = vadd.f32 %v97_v9, %v22_v7 }
  0xce   :  { %v164_v12 = vpop.f32.mrf.mxu0 }
  0xcf   :  { %116 = vst.msk [vmem:[#allocation2] sm:$0xff] %vm17_vm0, %v112_v11  ;;  %v115_v14 = vadd.f32 %v164_v12, %v25_v10 }
  0xd0   :  { %v100_v15 = vpop.f32.mrf.mxu0 }
  0xd1   :  { %119 = vst.msk [vmem:[#allocation2 + $0x18] sm:$0xff] %vm17_vm0, %v115_v14  ;;  %v113_v16 = vadd.f32 %v100_v15, %v23_v13 }
  0xd3   :  { %117 = vst.msk [vmem:[#allocation2 + $0x8] sm:$0xff] %vm17_vm0, %v113_v16 }
  0xd4   :  { %v125_v17 = vld [vmem:[#allocation2 + $0x10] sm:$0xff] }
  0xd5   :  { %129 = vst.msk [vmem:[#allocation3 + $0x10] sm:$0xff] %vm17_vm0, %v125_v17 }
  0xd6   :  { %v123_v18 = vld [vmem:[#allocation2] sm:$0xff] }
  0xd7   :  { %127 = vst.msk [vmem:[#allocation3] sm:$0xff] %vm17_vm0, %v123_v18 }
  0xd8   :  { %v126_v19 = vld [vmem:[#allocation2 + $0x18] sm:$0xff] }
  0xd9   :  { %130 = vst.msk [vmem:[#allocation3 + $0x18] sm:$0xff] %vm17_vm0, %v126_v19 }
  0xda   :  { %v124_v20 = vld [vmem:[#allocation2 + $0x8] sm:$0xff] }
  0xdb   :  { %128 = vst.msk [vmem:[#allocation3 + $0x8] sm:$0xff] %vm17_vm0, %v124_v20 }
  0xdc   :  { %184 = shalt.err (!%p181_p4)
}
  0xdd   :  { %s197_s18 = smov 128   ;;  %s198_s19 = smov 8  }
  0xde   :  { %142 = dma.vmem_to_hbm [thread:$0]  %s137_s16, 512, %s245_s2, [#allocation4], %s197_s18, %s197_s18, %s198_s19  }
  0xdf   :  { %193 = dma.done.wait [#allocation4], 512  }
  0xe0   :  { %194 = vsyncadd [#allocation4], 4294966784 }
  0xe1   :  { %146 = vsyncpa [#allocation4], 1 }

// kernel: flash_self_mha_forward.4
= control target key start
LH: loop header
LB: loop body
LE: loop exit
PB: predicated region body
PF: predicated region fallthrough
CT: control target
= control target key end

     0   :  { %s1406_s30 = smov 0   ;;  %s1408_s10 = smov 0   ;;  %s1538_s0 = inlined_call_operand.vmem [shape: bf16[2,4,16,8], index: 0, kind: input, shape index: {}]   ;;  %s1539_s1 = inlined_call_operand.vmem [shape: bf16[2,4,16,8], index: 1, kind: input, shape index: {}]   ;;  %s1540_s2 = inlined_call_operand.vmem [shape: bf16[2,4,16,8], index: 2, kind: input, shape index: {}]   ;;  %s1541_s3 = inlined_call_operand.vmem [shape: f32[16,8], index: 3, kind: input, shape index: {}, may-alias: {3,5}]   ;;  %s1542_s4 = inlined_call_operand.vmem [shape: f32[16,8], index: 4, kind: input, shape index: {}, may-alias: {4,6}]   ;;  %s1543_s5 = inlined_call_operand.vmem [shape: f32[16,8], index: 5, kind: input, shape index: {}, may-alias: {3,5}]   ;;  %s1544_s6 = inlined_call_operand.vmem [shape: f32[16,8], index: 6, kind: input, shape index: {}, may-alias: {4,6}]   ;;  %s1545_s7 = inlined_call_operand.vmem [shape: f32[1,8], index: 7, kind: input, shape index: {}]   ;;  %s1546_s8 = inlined_call_operand.vmem [shape: f32[1,8], index: 8, kind: input, shape index: {}]   ;;  %s1547_s9 = inlined_call_operand.vmem [shape: bf16[2,4,16,8], index: 9, kind: output, shape index: {}]  }
   0x1   :  { %s1410_s11 = smov 0   ;;  %s1412_s12 = smov 0  }
   0x2   :  { %s1414_s13 = smov 0  }
   0x3 LB: > { %s41_s14 = sadd.s32 1, %s1340_s11  ;;  %s45_s15 = sadd.s32 1, %s1344_s12  ;;  %s1348_s13 = sphi %s1414_s13, %s19_s13   ;;  %s1344_s12 = sphi %s1412_s12, %s1551_s12   ;;  %s1340_s11 = sphi %s1410_s11, %s1550_s11   ;;  %s1336_s10 = sphi %s1408_s10, %s1549_s10   ;;  %s1332_s30 = sphi %s1406_s30, %s1548_s30  }
   0x4   : > { %p43_p0 = scmp.ge.s32.totalorder %s41_s14, 4  ;;  %p1187_p1 = scmp.ge.s32.totalorder %s1348_s13, 1 }
   0x5   : > { %p420_p2 = scmp.lt.s32.totalorder %s1348_s13, 9 }
   0x6   : > { %s1553_s14 = smov (%p43_p0, %s41_s14), 0  ;;  %s1555_s15 = smov (!%p43_p0, %s45_s15), %s1344_s12 }
   0x7   : > { %p421_p3 = pnand %p1187_p1, %p420_p2  ;;  %p47_p4 = scmp.ge.s32.totalorder %s1555_s15, 2 }
   0x8   : > { %p519_p5 = scmp.lt.s32.totalorder (!%p421_p3), %s1336_s10, 1  ;;  %p521_p6 = scmp.lt.s32.totalorder (!%p421_p3), %s1332_s30, 3 }
   0x9   : > { %s1557_s15 = smov (%p47_p4, %s1555_s15), 0  ;;  %424 = sbr.rel (%p421_p3) target bundleno = 1107 (0x453), region = 56 }
   0xe   : > { %s1559_s10 = smov (!%p519_p5, %s1336_s10), 1  ;;  %s1561_s30 = smov (!%p521_p6, %s1332_s30), 3  ;;  %vm614_vm0 = vcmask 64512   ;;  %v1200_v27 = vld [vmem:[%s1545_s7] ss:$0 sm:$0xff]  ;;  %v1352_v39 = vmov 0.0  }
   0xf   : > { %s1189_s16 = sshll.u32 %s1559_s10, 3  ;;  %s1188_s17 = sshll.u32 %s1561_s30, 1  ;;  %v1203_v30 = vld [vmem:[%s1546_s8] ss:$0 sm:$0xff]  ;;  %681 = vst.msk [vmem:[#allocation5] sm:$0xff] %vm614_vm0, %v1352_v39  ;;  %682 = vst.msk [vmem:[#allocation5 + $0x8] sm:$0xff] %vm614_vm0, %v1352_v39  ;;  %1228 = vmatprep.subr.bf16.mxu0 %v1352_v39  ;;  %1234 = vmatprep.subr.bf16.mxu1 %v1352_v39 }
  0x10   : > { %s528_s18 = sadd.s32 %s1189_s16, %s1188_s17  ;;  %s1350_s30 = smov 124   ;;  %vm1353_vm1 = vmmov 0   ;;  %v608_v42 = vld [vmem:[%s1542_s4] sm:$0xff]  ;;  %v609_v46 = vld [vmem:[%s1542_s4 + $0x8] sm:$0xff]  ;;  %vm662_vm2 = vcmask 31744   ;;  %vm673_vm3 = vcmask 60416  }
  0x11   : > { %s1436_s19 = sshll.u32 %s528_s18, 2  ;;  %s1351_s10 = smov 4   ;;  %1230 = vmatprep.mubr.msk.bf16.mxu0 %vm1353_vm1, %v1352_v39  ;;  %1236 = vmatprep.mubr.msk.bf16.mxu1 %vm1353_vm1, %v1352_v39  ;;  %v606_v44 = vld [vmem:[%s1541_s3] sm:$0xff]  ;;  %v607_v51 = vld [vmem:[%s1541_s3 + $0x8] sm:$0xff]  ;;  %vm676_vm4 = vcmask 7168   ;;  %vm802_vm5 = vcmask 130048  }
  0x12   : > { %s530_s22 = scalar_lea.vmem %s1538_s0, %s1436_s19  ;;  %s544_s25 = scalar_lea.vmem %s1539_s1, %s1436_s19  ;;  %v686_v63 = vld [vmem:[%s1543_s5] sm:$0xff]  ;;  %679 = vst.msk [vmem:[#allocation4] sm:$0xff] %vm676_vm4, %v1352_v39  ;;  %680 = vst.msk [vmem:[#allocation4 + $0x8] sm:$0xff] %vm676_vm4, %v1352_v39 }
  0x13   : > { %v1217_v0 = vld [vmem:[%s530_s22] sm:$0xff]   ;;  %s558_s20 = scalar_lea.vmem %s1540_s2, %s1436_s19  ;;  %s596_s23 = scalar_lea.vmem %s1547_s9, %s1436_s19 }
  0x14   : > { %v1221_v1 = vld [vmem:[%s544_s25] sm:$0xff]   ;;  %v1218_v2 = vunpack.c.l.bf16 %v1217_v0  ;;  %v1219_v4 = vunpack.c.h.bf16 %v1217_v0 }
  0x15   : > { %v1222_v3 = vunpack.c.l.bf16 %v1221_v1  ;;  %v1223_v5 = vunpack.c.h.bf16 %v1221_v1  ;;  %v688_v0 = vld [vmem:[%s1544_s6] sm:$0xff]  ;;  %v689_v1 = vld [vmem:[%s1544_s6 + $0x8] sm:$0xff] }
  0x16   : > { %v612_v6 = vmul.f32 %v1218_v2, %v1218_v2  ;;  %v613_v8 = vmul.f32 %v1219_v4, %v1219_v4 }
  0x17   : > { %v692_v7 = vmul.f32 %v1222_v3, %v1222_v3  ;;  %v693_v9 = vmul.f32 %v1223_v5, %v1223_v5 }
  0x18   : > { %v615_v10 = vsel %vm614_vm0, %v612_v6, 0.0  ;;  %v618_v12 = vsel %vm614_vm0, %v613_v8, 0.0  ;;  %v687_v6 = vld [vmem:[%s1543_s5 + $0x8] sm:$0xff] }
  0x19   : > { %v695_v11 = vsel %vm614_vm0, %v692_v7, 0.0  ;;  %616 = vadd.xlane.f32.xlu0 %v615_v10  ;;  %v698_v13 = vsel %vm614_vm0, %v693_v9, 0.0 }
  0x1a   : > { %696 = vadd.xlane.f32.xlu1 %v695_v11 }
  0x1d   : > { %619 = vadd.xlane.f32.xlu0 %v618_v12 }
  0x1e   : > { %699 = vadd.xlane.f32.xlu1 %v698_v13 }
  0xa2   : > { %v617_v14 = vpop.xlane.xlu0 %616 }
  0xa3   : > { %v697_v15 = vpop.xlane.xlu1 %696  ;;  %v622_v16 = vmul.f32 0.125, %v617_v14 }
  0xa4   : > { %v702_v17 = vmul.f32 0.125, %v697_v15 }
  0xa5   : > { %v624_v18 = vadd.f32 1e-06, %v622_v16 }
  0xa6   : > { %v704_v19 = vadd.f32 1e-06, %v702_v17  ;;  %v620_v20 = vpop.xlane.xlu0 %619 }
  0xa7   : > { %v700_v21 = vpop.xlane.xlu1 %699  ;;  %1290 = vrsqrt.f32 %v624_v18  ;;  %v623_v22 = vmul.f32 0.125, %v620_v20 }
  0xa8   : > { %1292 = vrsqrt.f32 %v704_v19  ;;  %v703_v24 = vmul.f32 0.125, %v700_v21 }
  0xa9   : > { %v625_v23 = vadd.f32 1e-06, %v623_v22  ;;  %v1354_v22 = vmov -inf  }
  0xaa   : > { %v705_v25 = vadd.f32 1e-06, %v703_v24  ;;  %677 = vst.msk [vmem:[#allocation3] sm:$0xff] %vm676_vm4, %v1354_v22  ;;  %678 = vst.msk [vmem:[#allocation3 + $0x8] sm:$0xff] %vm676_vm4, %v1354_v22 }
  0xab   : > { %1294 = vrsqrt.f32 %v625_v23 }
  0xac   : > { %1296 = vrsqrt.f32 %v705_v25 }
  0xb4   : > { %v1291_v26 = vpop.eup %1290 }
  0xb5   : > { %v1293_v28 = vpop.eup %1292  ;;  %v628_v29 = vmul.f32 %v1291_v26, %v1218_v2 }
  0xb6   : > { %v708_v31 = vmul.f32 %v1293_v28, %v1222_v3 }
  0xb7   : > { %v636_v32 = vmul.f32 %v1200_v27, %v628_v29  ;;  %v1355_v29 = vmov 0  }
  0xb8   : > { %v1295_v33 = vpop.eup %1294  ;;  %v716_v34 = vmul.f32 %v1203_v30, %v708_v31  ;;  %1286 = vset.pattern.permute.xlu0 %v1355_v29  ;;  %1287 = vset.pattern.permute.xlu1 %v1355_v29 }
  0xb9   : > { %642 = vrot.lane.b32.xlu0 %v636_v32, %s1350_s30  ;;  %v629_v35 = vmul.f32 %v1295_v33, %v1219_v4  ;;  %v1297_v37 = vpop.eup %1296  ;;  %v638_v49 = vmul.f32 %v636_v32, %v606_v44  ;;  %v801_v33 = vld [vmem:[#allocation3 + $0x8] sm:$0xff] }
  0xba   : > { %v709_v38 = vmul.f32 %v1297_v37, %v1223_v5  ;;  %v718_v7 = vmul.f32 %v716_v34, %v686_v63 }
  0xbb   : > { %v637_v36 = vmul.f32 %v1200_v27, %v629_v35 }
  0xbc   : > { %v717_v40 = vmul.f32 %v1203_v30, %v709_v38  ;;  %v800_v30 = vld [vmem:[#allocation3] sm:$0xff]  ;;  %v1289_v38 = vld [vmem:[%s558_s20] sm:$0xff]  }
  0xbd   : > { %722 = vrot.lane.b32.xlu0 %v716_v34, %s1350_s30  ;;  %644 = vrot.lane.b32.xlu1 %v637_v36, %s1350_s30  ;;  %v639_v56 = vmul.f32 %v637_v36, %v607_v51 }
  0xbe   : > { %v719_v12 = vmul.f32 %v717_v40, %v687_v6  ;;  %1235 = vmatpush3.bf16.msra.mxu1 %v1289_v38 }
  0xc1   : > { %732 = vrot.lane.b32.xlu0 %v716_v34, %s1351_s10  ;;  %652 = vrot.lane.b32.xlu1 %v636_v32, %s1351_s10 }
  0xc5   : > { %654 = vrot.lane.b32.xlu1 %v637_v36, %s1351_s10 }
  0xc9   : > { %724 = vrot.lane.b32.xlu1 %v717_v40, %s1350_s30 }
  0xcd   : > { %734 = vrot.lane.b32.xlu1 %v717_v40, %s1351_s10 }
 0x12b   : > { %v643_v41 = vpop.permute.xlu0 %642 }
 0x12c   : > { %v648_v45 = vmul.f32 %v643_v41, %v608_v42 }
 0x12e   : > { %v650_v52 = vadd.f32 %v648_v45, %v638_v49 }
 0x12f   : > { %v645_v43 = vpop.permute.xlu1 %644  ;;  %v723_v47 = vpop.permute.xlu0 %722 }
 0x130   : > { %v649_v53 = vmul.f32 %v645_v43, %v609_v46  ;;  %v728_v8 = vmul.f32 %v723_v47, %v688_v0 }
 0x132   : > { %v651_v61 = vadd.f32 %v649_v53, %v639_v56  ;;  %v730_v14 = vadd.f32 %v728_v8, %v718_v7 }
 0x133   : > { %v653_v48 = vpop.permute.xlu1 %652  ;;  %v733_v60 = vpop.permute.xlu0 %732 }
 0x134   : > { %v658_v50 = vmul.f32 %v653_v48, %v608_v42  ;;  %v738_v3 = vmul.f32 %v733_v60, %v688_v0 }
 0x136   : > { %v660_v54 = vadd.f32 %v658_v50, %v638_v49  ;;  %v740_v11 = vadd.f32 %v738_v3, %v718_v7 }
 0x137   : > { %v655_v55 = vpop.permute.xlu1 %654 }
 0x138   : > { %v663_v57 = vsel %vm662_vm2, %v650_v52, %v660_v54  ;;  %v659_v58 = vmul.f32 %v655_v55, %v609_v46  ;;  %v743_v17 = vsel %vm662_vm2, %v730_v14, %v740_v11  ;;  %v833_v54 = vld [vmem:[#allocation4] sm:$0xff] }
 0x139   : > { %v1212_v59 = vpack.c.bf16 %v663_v57, %v663_v57  ;;  %v834_v57 = vld [vmem:[#allocation4 + $0x8] sm:$0xff] }
 0x13a   : > { %v661_v62 = vadd.f32 %v659_v58, %v639_v56 }
 0x13b   : > { %674 = vst.msk [vmem:[#allocation2] sm:$0xf] %vm673_vm3, %v1212_v59  ;;  %v725_v2 = vpop.permute.xlu1 %724 }
 0x13c   : > { %v664_v4 = vsel %vm662_vm2, %v651_v61, %v661_v62  ;;  %v729_v9 = vmul.f32 %v725_v2, %v689_v1  ;;  %v848_v2 = vld [vmem:[#allocation5] sm:$0xff] }
 0x13d   : > { %v1213_v5 = vpack.c.bf16 %v664_v4, %v664_v4 }
 0x13e   : > { %v731_v15 = vadd.f32 %v729_v9, %v719_v12 }
 0x13f   : > { %675 = vst.msk [vmem:[#allocation2 + $0x4] sm:$0xf] %vm673_vm3, %v1213_v5  ;;  %v735_v10 = vpop.permute.xlu1 %734  ;;  %v849_v5 = vld [vmem:[#allocation5 + $0x8] sm:$0xff] }
 0x140   : > { %v739_v13 = vmul.f32 %v735_v10, %v689_v1 }
 0x142   : > { %v741_v16 = vadd.f32 %v739_v13, %v719_v12 }
 0x144   : > { %v744_v18 = vsel %vm662_vm2, %v731_v15, %v741_v16 }
 0x145   : > { %v745_v19 = vpack.c.bf16 %v744_v18, %v743_v17 }
 0x146   : > { %v1288_v21 = vld [vmem:[#allocation2] sm:$0xff]  }
 0x147   : > { %v757_v20 = vsel %vm614_vm0, %v745_v19, 0 }
 0x148   : > { %1229 = vmatpush3.bf16.xpose.msra.mxu0 %v757_v20 }
 0x14f   : > { %1231 = vmatmul.mubr.msk.bf16.vlgmr.msra.gmra.mxu0 %vm614_vm0, %v1288_v21 }
 0x20f   : > { %v793_v23 = vpop.f32.mrf.mxu0 }
 0x210   : > { %v803_v24 = vsel %vm802_vm5, %v793_v23, -inf }
 0x211   : > { %804 = vmax.xlane.f32.xlu0 %v803_v24  ;;  %v1232_v25 = vpop.f32.mrf.mxu0 }
 0x213   : > { %v796_v26 = vpop.f32.mrf.mxu0 }
 0x214   : > { %v806_v27 = vsel %vm802_vm5, %v796_v26, -inf }
 0x215   : > { %807 = vmax.xlane.f32.xlu1 %v806_v27  ;;  %v1233_v28 = vpop.f32.mrf.mxu0 }
 0x29a   : > { %v805_v31 = vpop.xlane.xlu0 %804 }
 0x29b   : > { %v809_v32 = vmax.f32 %v800_v30, %v805_v31 }
 0x29d   : > { %v811_v34 = vsub.f32 %v800_v30, %v809_v32  ;;  %919 = vst.msk [vmem:[#allocation3] sm:$0xff] %vm676_vm4, %v809_v32  ;;  %819 = vperm.xlu0 %1286, %v809_v32  }
 0x29e   : > { %v808_v35 = vpop.xlane.xlu1 %807 }
 0x29f   : > { %v810_v36 = vmax.f32 %v801_v33, %v808_v35  ;;  %v813_v46 = vmul.f32 1.442695, %v811_v34 }
 0x2a1   : > { %v812_v37 = vsub.f32 %v801_v33, %v810_v36  ;;  %920 = vst.msk [vmem:[#allocation3 + $0x8] sm:$0xff] %vm676_vm4, %v810_v36  ;;  %824 = vperm.xlu1 %1287, %v810_v36  }
 0x2a3   : > { %v815_v51 = vmul.f32 1.442695, %v812_v37 }
 0x318   : > { %v820_v39 = vpop.permute.xlu0 %819 }
 0x319   : > { %v827_v40 = vsub.f32 %v793_v23, %v820_v39 }
 0x31b   : > { %v829_v41 = vmul.f32 1.442695, %v827_v40 }
 0x31c   : > { %v825_v42 = vpop.permute.xlu1 %824 }
 0x31d   : > { %1298 = vpow2.f32 %v829_v41  ;;  %v828_v43 = vsub.f32 %v796_v26, %v825_v42 }
 0x31f   : > { %v831_v44 = vmul.f32 1.442695, %v828_v43 }
 0x321   : > { %1300 = vpow2.f32 %v831_v44 }
 0x322   : > { %1302 = vpow2.f32 %v813_v46 }
 0x323   : > { %1304 = vpow2.f32 %v815_v51 }
 0x32a   : > { %v1299_v45 = vpop.eup %1298 }
 0x32b   : > { %v837_v47 = vsel %vm802_vm5, %v1299_v45, 0.0 }
 0x32c   : > { %838 = vadd.xlane.f32.xlu1 %v837_v47 }
 0x32e   : > { %v1301_v48 = vpop.eup %1300 }
 0x32f   : > { %v840_v49 = vsel %vm802_vm5, %v1301_v48, 0.0  ;;  %v862_v50 = vpack.c.bf16 %v1301_v48, %v1299_v45  ;;  %v1303_v52 = vpop.eup %1302 }
 0x330   : > { %841 = vadd.xlane.f32.xlu0 %v840_v49  ;;  %v1305_v53 = vpop.eup %1304  ;;  %v835_v55 = vmul.f32 %v1303_v52, %v833_v54 }
 0x331   : > { %1237 = vmatmul.mubr.msk.bf16.vlgmr.msra.gmra.mxu1 %vm802_vm5, %v862_v50  ;;  %v836_v59 = vmul.f32 %v1305_v53, %v834_v57 }
 0x33d   : > { %852 = vperm.xlu1 %1287, %v1303_v52  }
 0x346   : > { %857 = vperm.xlu0 %1286, %v1305_v53  }
 0x3b5   : > { %v839_v56 = vpop.xlane.xlu1 %838 }
 0x3b6   : > { %v843_v58 = vadd.f32 %v839_v56, %v835_v55 }
 0x3b8   : > { %846 = vst.msk [vmem:[#allocation4] sm:$0xff] %vm676_vm4, %v843_v58 }
 0x3b9   : > { %v842_v60 = vpop.xlane.xlu0 %841  ;;  %v853_v3 = vpop.permute.xlu1 %852 }
 0x3ba   : > { %v844_v61 = vadd.f32 %v842_v60, %v836_v59  ;;  %v860_v4 = vmul.f32 %v853_v3, %v848_v2 }
 0x3bc   : > { %847 = vst.msk [vmem:[#allocation4 + $0x8] sm:$0xff] %vm676_vm4, %v844_v61 }
 0x3bf   : > { %v926_v62 = vld [vmem:[#allocation4] sm:$0xff] }
 0x3c0   : > { %1306 = vrcp.f32 %v926_v62 }
 0x3c1   : > { %v858_v6 = vpop.permute.xlu0 %857 }
 0x3c2   : > { %v861_v10 = vmul.f32 %v858_v6, %v849_v5 }
 0x3c3   : > { %v927_v63 = vld [vmem:[#allocation4 + $0x8] sm:$0xff] }
 0x3c4   : > { %1308 = vrcp.f32 %v927_v63 }
 0x3cd   : > { %v1307_v0 = vpop.eup %1306 }
 0x3ce   : > { %932 = vperm.xlu1 %1287, %v1307_v0  }
 0x3d1   : > { %v1309_v1 = vpop.eup %1308 }
 0x3d2   : > { %937 = vperm.xlu1 %1287, %v1309_v1  }
 0x3f1   : > { %v908_v7 = vpop.f32.mrf.mxu1 }
 0x3f2   : > { %v915_v8 = vadd.f32 %v908_v7, %v860_v4 }
 0x3f3   : > { %v1238_v9 = vpop.f32.mrf.mxu1 }
 0x3f4   : > { %917 = vst.msk [vmem:[#allocation5] sm:$0xff] %vm614_vm0, %v915_v8 }
 0x3f5   : > { %v911_v11 = vpop.f32.mrf.mxu1 }
 0x3f6   : > { %v916_v12 = vadd.f32 %v911_v11, %v861_v10 }
 0x3f7   : > { %v1239_v13 = vpop.f32.mrf.mxu1 }
 0x3f8   : > { %918 = vst.msk [vmem:[#allocation5 + $0x8] sm:$0xff] %vm614_vm0, %v916_v12 }
 0x3fb   : > { %v924_v14 = vld [vmem:[#allocation5] sm:$0xff] }
 0x3ff   : > { %v925_v18 = vld [vmem:[#allocation5 + $0x8] sm:$0xff] }
 0x449   : > { %v933_v15 = vpop.permute.xlu1 %932 }
 0x44a   : > { %v940_v16 = vmul.f32 %v933_v15, %v924_v14 }
 0x44c   : > { %v1214_v17 = vpack.c.bf16 %v940_v16, %v940_v16 }
 0x44d   : > { %v938_v19 = vpop.permute.xlu1 %937 }
 0x44e   : > { %951 = vst.msk [vmem:[%s596_s23] sm:$0xf] %vm673_vm3, %v1214_v17  ;;  %v941_v20 = vmul.f32 %v938_v19, %v925_v18 }
 0x450   : > { %v1215_v21 = vpack.c.bf16 %v941_v20, %v941_v20 }
 0x452   : > { %952 = vst.msk [vmem:[%s596_s23 + $0x4] sm:$0xf] %vm673_vm3, %v1215_v21 }
 0x453 PF: > { %s19_s13 = sadd.s32 1, %s1348_s13   ;;  %s1548_s30 = smov %s1340_s11 }
 0x454   : > { %p16_p7 = scmp.ge.s32.totalorder %s19_s13, 10   ;;  %s1549_s10 = smov %s1344_s12 }
 0x455   : > { %s1550_s11 = smov %s1553_s14  ;;  %s1551_s12 = smov %s1557_s15 }
 0x456   :  { %18 = sbr.rel (!%p16_p7) target bundleno = 3 (0x3), region = 112 }

</bundles_post_ra>
